<compile_context>
chip_gen: v5e
topology: v5e:2x2
jax: 0.10.0
libtpu: 0.0.40
codegen_flags: <defaults>
</compile_context>

<pallas_src>
import functools

import jax
import jax.numpy as jnp
from jax.experimental import pallas as pl
from jax.experimental.pallas import tpu as pltpu


def _leaky_relu(x, slope=0.2):
    return jnp.where(x > 0, x, jnp.float32(slope) * x)


def _dnet_kernel(*refs, training):
    if training:
        (x_ref, noise_ref, m1_ref, m2_ref,
         w1_ref, b1_ref, w2_ref, b2_ref, w3_ref, b3_ref, o_ref) = refs
    else:
        (x_ref, w1_ref, b1_ref, w2_ref, b2_ref, w3_ref, b3_ref, o_ref) = refs
        noise_ref = m1_ref = m2_ref = None

    x = x_ref[...].astype(jnp.float32)
    if training:
        # TODO(synk): GaussianNoise class is not defined in the source snippet;
        # assumed additive N(0, sigma=0.1) noise applied in training mode only.
        x = x + noise_ref[...]

    # Hidden layer 1: bf16 MXU operands, f32 accumulation; f32 elementwise.
    h = jnp.dot(x.astype(jnp.bfloat16), w1_ref[...],
                preferred_element_type=jnp.float32) + b1_ref[...]
    h = _leaky_relu(h)
    if training:
        h = h * m1_ref[...]            # pre-scaled keep mask: 0 or 1/(1-p)

    # Hidden layer 2.
    h = jnp.dot(h.astype(jnp.bfloat16), w2_ref[...],
                preferred_element_type=jnp.float32) + b2_ref[...]
    h = _leaky_relu(h)
    if training:
        h = h * m2_ref[...]

    # Output layer (out_features=1): VPU multiply + XLU lane reduction instead
    # of an MXU matmul with a single live result lane.  b3 is an SMEM scalar.
    logits = jnp.sum(h * w3_ref[...], axis=-1, keepdims=True) + b3_ref[0]

    # Sigmoid (divide on a (TILE_B, 1) slab is negligible).
    o_ref[...] = (1.0 / (1.0 + jnp.exp(-logits))).astype(o_ref.dtype)


def d_net_forward(x, params, key, *, training=True, noise_sigma=0.1,
                  dropout_p=0.2, tile_b=512):
    """Forward pass. `params` = (w1, b1, w2, b2, w3, b3) with w in [in, out]."""
    w1, b1, w2, b2, w3, b3 = params
    B, F = x.shape
    H = w1.shape[1]
    assert w1.shape == (F, H) and w2.shape == (H, H) and w3.shape == (H, 1)

    # Batch tile: full batch if small, else 512 rows (multiple of 8; working
    # set stays tiny relative to VMEM on v5e/v6e/v7x).
    tb = B if B <= tile_b else tile_b
    grid = (pl.cdiv(B, tb),)

    row = lambda i: (i, 0)   # batch-tiled operands
    rep = lambda i: (0, 0)   # VMEM-resident weights/biases (never re-DMA'd)

    # One-time host-side weight prep: bf16 MXU weights, lane-dense w3 row,
    # scalar b3 for SMEM.
    w1b = w1.astype(jnp.bfloat16)
    w2b = w2.astype(jnp.bfloat16)
    w3r = w3.reshape(1, H).astype(jnp.float32)
    b3s = b3.reshape(-1)[:1].astype(jnp.float32)
    b1r = b1.reshape(1, H).astype(jnp.float32)
    b2r = b2.reshape(1, H).astype(jnp.float32)

    if training:
        kn, k1, k2 = jax.random.split(key, 3)
        keep = 1.0 - dropout_p
        noise = (noise_sigma * jax.random.normal(kn, (B, F))).astype(jnp.float32)
        m1 = (jax.random.bernoulli(k1, keep, (B, H)).astype(jnp.float32) / keep)
        m2 = (jax.random.bernoulli(k2, keep, (B, H)).astype(jnp.float32) / keep)
        rand_args = (noise, m1, m2)
        rand_specs = [
            pl.BlockSpec((tb, F), row),
            pl.BlockSpec((tb, H), row),
            pl.BlockSpec((tb, H), row),
        ]
    else:
        rand_args = ()
        rand_specs = []

    kernel = functools.partial(_dnet_kernel, training=training)

    return pl.pallas_call(
        kernel,
        out_shape=jax.ShapeDtypeStruct((B, 1), jnp.float32),
        grid=grid,
        in_specs=[
            pl.BlockSpec((tb, F), row),               # x   (batch-tiled)
            *rand_specs,                              # noise, mask1, mask2
            pl.BlockSpec((F, H), rep),                # W1 (bf16, resident)
            pl.BlockSpec((1, H), rep),                # b1
            pl.BlockSpec((H, H), rep),                # W2 (bf16, resident)
            pl.BlockSpec((1, H), rep),                # b2
            pl.BlockSpec((1, H), rep),                # W3 row (f32, VPU path)
            pl.BlockSpec(memory_space=pltpu.MemorySpace.SMEM),  # b3 scalar
        ],
        out_specs=pl.BlockSpec((tb, 1), row),
        compiler_params=pltpu.CompilerParams(
            dimension_semantics=("parallel",)),       # megacore split on v7x
    )(x, *rand_args, w1b, b1r, w2b, b2r, w3r, b3s)


def init_params(key, input_size, hidden_size):
    """Deterministic init matching nn.Linear's U(-1/sqrt(fan_in), 1/sqrt(fan_in))."""
    def linear(k, fan_in, fan_out):
        kw, kb = jax.random.split(k)
        bound = 1.0 / jnp.sqrt(jnp.float32(fan_in))
        w = jax.random.uniform(kw, (fan_in, fan_out), jnp.float32, -bound, bound)
        b = jax.random.uniform(kb, (1, fan_out), jnp.float32, -bound, bound)
        return w, b

    k1, k2, k3 = jax.random.split(key, 3)
    w1, b1 = linear(k1, input_size, hidden_size)
    w2, b2 = linear(k2, hidden_size, hidden_size)
    w3, b3 = linear(k3, hidden_size, 1)
    return (w1, b1, w2, b2, w3, b3)


if __name__ == "__main__":
    B, INPUT_SIZE, HIDDEN = 8, 32, 128   # small shapes consistent with the MLP

    key = jax.random.PRNGKey(0)
    k_params, k_x, k_rand = jax.random.split(key, 3)
    params = init_params(k_params, INPUT_SIZE, HIDDEN)
    x = jax.random.normal(k_x, (B, INPUT_SIZE), jnp.float32)

    out = d_net_forward(x, params, k_rand, training=True)
    out = jax.block_until_ready(out)

    assert out.shape == (B, 1)
    assert bool(jnp.all(jnp.isfinite(out)))
    assert bool(jnp.all((out >= 0.0) & (out <= 1.0)))
    print("KERNEL_OK")
</pallas_src>

<mosaic_0001>
module attributes {stable_mosaic.version = 11 : i64} {
  func.func @_dnet_kernel(%arg0: i32, %arg1: memref<8x32xf32, #tpu.memory_space<vmem>>, %arg2: memref<8x32xf32, #tpu.memory_space<vmem>>, %arg3: memref<8x128xf32, #tpu.memory_space<vmem>>, %arg4: memref<8x128xf32, #tpu.memory_space<vmem>>, %arg5: memref<32x128xbf16, #tpu.memory_space<vmem>>, %arg6: memref<1x128xf32, #tpu.memory_space<vmem>>, %arg7: memref<128x128xbf16, #tpu.memory_space<vmem>>, %arg8: memref<1x128xf32, #tpu.memory_space<vmem>>, %arg9: memref<1x128xf32, #tpu.memory_space<vmem>>, %arg10: memref<1xf32, #tpu.memory_space<smem>>, %arg11: memref<8x1xf32, #tpu.memory_space<vmem>>) attributes {dimension_semantics = [#tpu.dimension_semantics<parallel>], iteration_bounds = array<i64: 1>, scalar_prefetch = 0 : i64, scratch_operands = 0 : i64, tpu.core_type = #tpu.core_type<tc>, window_params = [{transform_indices = @transform_0, window_bounds = array<i64: 8, 32>}, {transform_indices = @transform_1, window_bounds = array<i64: 8, 32>}, {transform_indices = @transform_2, window_bounds = array<i64: 8, 128>}, {transform_indices = @transform_3, window_bounds = array<i64: 8, 128>}, {pipeline_mode = #tpu.pipeline_mode<synchronous>, transform_indices = @transform_4, window_bounds = array<i64: 32, 128>}, {pipeline_mode = #tpu.pipeline_mode<synchronous>, transform_indices = @transform_5, window_bounds = array<i64: 1, 128>}, {pipeline_mode = #tpu.pipeline_mode<synchronous>, transform_indices = @transform_6, window_bounds = array<i64: 128, 128>}, {pipeline_mode = #tpu.pipeline_mode<synchronous>, transform_indices = @transform_7, window_bounds = array<i64: 1, 128>}, {pipeline_mode = #tpu.pipeline_mode<synchronous>, transform_indices = @transform_8, window_bounds = array<i64: 1, 128>}, {transform_indices = @transform_9, window_bounds = array<i64: 1>}, {transform_indices = @transform_10, window_bounds = array<i64: 8, 1>}]} {
    %c0 = arith.constant 0 : index
    %c0_0 = arith.constant 0 : index
    %0 = vector.load %arg1[%c0, %c0_0] : memref<8x32xf32, #tpu.memory_space<vmem>>, vector<8x32xf32>
    %c0_1 = arith.constant 0 : index
    %c0_2 = arith.constant 0 : index
    %1 = vector.load %arg2[%c0_1, %c0_2] : memref<8x32xf32, #tpu.memory_space<vmem>>, vector<8x32xf32>
    %2 = arith.addf %0, %1 : vector<8x32xf32>
    %3 = arith.truncf %2 : vector<8x32xf32> to vector<8x32xbf16>
    %c0_3 = arith.constant 0 : index
    %c0_4 = arith.constant 0 : index
    %4 = vector.load %arg5[%c0_3, %c0_4] : memref<32x128xbf16, #tpu.memory_space<vmem>>, vector<32x128xbf16>
    %cst = arith.constant dense<0.000000e+00> : vector<8x128xf32>
    %5 = tpu.matmul %3, %4, %cst {dimension_numbers = #tpu.dot_dimension_numbers<[1], [0], [0], [1], [0, 0, 1, 1], [], []>} : vector<8x32xbf16>, vector<32x128xbf16>, vector<8x128xf32> -> vector<8x128xf32>
    %c0_5 = arith.constant 0 : index
    %c0_6 = arith.constant 0 : index
    %6 = vector.load %arg6[%c0_5, %c0_6] : memref<1x128xf32, #tpu.memory_space<vmem>>, vector<1x128xf32>
    %7 = vector.broadcast %6 : vector<1x128xf32> to vector<8x128xf32>
    %8 = arith.addf %5, %7 : vector<8x128xf32>
    %cst_7 = arith.constant 0.000000e+00 : f32
    %9 = vector.broadcast %cst_7 : f32 to vector<8x128xf32>
    %10 = arith.cmpf ogt, %8, %9 : vector<8x128xf32>
    %cst_8 = arith.constant 2.000000e-01 : f32
    %11 = vector.broadcast %cst_8 : f32 to vector<8x128xf32>
    %12 = arith.mulf %11, %8 : vector<8x128xf32>
    %13 = arith.select %10, %8, %12 : vector<8x128xi1>, vector<8x128xf32>
    %c0_9 = arith.constant 0 : index
    %c0_10 = arith.constant 0 : index
    %14 = vector.load %arg3[%c0_9, %c0_10] : memref<8x128xf32, #tpu.memory_space<vmem>>, vector<8x128xf32>
    %15 = arith.mulf %13, %14 : vector<8x128xf32>
    %16 = arith.truncf %15 : vector<8x128xf32> to vector<8x128xbf16>
    %c0_11 = arith.constant 0 : index
    %c0_12 = arith.constant 0 : index
    %17 = vector.load %arg7[%c0_11, %c0_12] : memref<128x128xbf16, #tpu.memory_space<vmem>>, vector<128x128xbf16>
    %cst_13 = arith.constant dense<0.000000e+00> : vector<8x128xf32>
    %18 = tpu.matmul %16, %17, %cst_13 {dimension_numbers = #tpu.dot_dimension_numbers<[1], [0], [0], [1], [0, 0, 1, 1], [], []>} : vector<8x128xbf16>, vector<128x128xbf16>, vector<8x128xf32> -> vector<8x128xf32>
    %c0_14 = arith.constant 0 : index
    %c0_15 = arith.constant 0 : index
    %19 = vector.load %arg8[%c0_14, %c0_15] : memref<1x128xf32, #tpu.memory_space<vmem>>, vector<1x128xf32>
    %20 = vector.broadcast %19 : vector<1x128xf32> to vector<8x128xf32>
    %21 = arith.addf %18, %20 : vector<8x128xf32>
    %cst_16 = arith.constant 0.000000e+00 : f32
    %22 = vector.broadcast %cst_16 : f32 to vector<8x128xf32>
    %23 = arith.cmpf ogt, %21, %22 : vector<8x128xf32>
    %cst_17 = arith.constant 2.000000e-01 : f32
    %24 = vector.broadcast %cst_17 : f32 to vector<8x128xf32>
    %25 = arith.mulf %24, %21 : vector<8x128xf32>
    %26 = arith.select %23, %21, %25 : vector<8x128xi1>, vector<8x128xf32>
    %c0_18 = arith.constant 0 : index
    %c0_19 = arith.constant 0 : index
    %27 = vector.load %arg4[%c0_18, %c0_19] : memref<8x128xf32, #tpu.memory_space<vmem>>, vector<8x128xf32>
    %28 = arith.mulf %26, %27 : vector<8x128xf32>
    %c0_20 = arith.constant 0 : index
    %c0_21 = arith.constant 0 : index
    %29 = vector.load %arg9[%c0_20, %c0_21] : memref<1x128xf32, #tpu.memory_space<vmem>>, vector<1x128xf32>
    %30 = vector.broadcast %29 : vector<1x128xf32> to vector<8x128xf32>
    %31 = arith.mulf %28, %30 : vector<8x128xf32>
    %cst_22 = arith.constant dense<0.000000e+00> : vector<8xf32>
    %32 = vector.multi_reduction <add>, %31, %cst_22 [1] : vector<8x128xf32> to vector<8xf32>
    %33 = vector.shape_cast %32 : vector<8xf32> to vector<8x1xf32>
    %c0_23 = arith.constant 0 : index
    %34 = memref.load %arg10[%c0_23] : memref<1xf32, #tpu.memory_space<smem>>
    %35 = vector.broadcast %34 : f32 to vector<8x1xf32>
    %36 = arith.addf %33, %35 : vector<8x1xf32>
    %cst_24 = arith.constant 0.000000e+00 : f32
    %37 = vector.broadcast %cst_24 : f32 to vector<8x1xf32>
    %38 = arith.subf %37, %36 : vector<8x1xf32>
    %39 = math.exp %38 : vector<8x1xf32>
    %cst_25 = arith.constant 1.000000e+00 : f32
    %40 = vector.broadcast %cst_25 : f32 to vector<8x1xf32>
    %41 = arith.addf %40, %39 : vector<8x1xf32>
    %cst_26 = arith.constant 1.000000e+00 : f32
    %42 = vector.broadcast %cst_26 : f32 to vector<8x1xf32>
    %43 = arith.divf %42, %41 : vector<8x1xf32>
    %c0_27 = arith.constant 0 : index
    %c0_28 = arith.constant 0 : index
    %44 = vector.load %arg11[%c0_27, %c0_28] : memref<8x1xf32, #tpu.memory_space<vmem>>, vector<8x1xf32>
    tpu.vector_store %arg11[%c0_27, %c0_28], %43 {strides = array<i32>} : memref<8x1xf32, #tpu.memory_space<vmem>>, vector<8x1xf32>,
    return
  }
  func.func @transform_0(%arg0: i32) -> (i32, i32) {
    %c0_i32 = arith.constant 0 : i32
    %c0_i32_0 = arith.constant 0 : i32
    return %arg0, %c0_i32 : i32, i32
  }
  func.func @transform_1(%arg0: i32) -> (i32, i32) {
    %c0_i32 = arith.constant 0 : i32
    %c0_i32_0 = arith.constant 0 : i32
    return %arg0, %c0_i32 : i32, i32
  }
  func.func @transform_2(%arg0: i32) -> (i32, i32) {
    %c0_i32 = arith.constant 0 : i32
    %c0_i32_0 = arith.constant 0 : i32
    return %arg0, %c0_i32 : i32, i32
  }
  func.func @transform_3(%arg0: i32) -> (i32, i32) {
    %c0_i32 = arith.constant 0 : i32
    %c0_i32_0 = arith.constant 0 : i32
    return %arg0, %c0_i32 : i32, i32
  }
  func.func @transform_4(%arg0: i32) -> (i32, i32) {
    %c0_i32 = arith.constant 0 : i32
    %c0_i32_0 = arith.constant 0 : i32
    %c0_i32_1 = arith.constant 0 : i32
    return %c0_i32, %c0_i32_0 : i32, i32
  }
  func.func @transform_5(%arg0: i32) -> (i32, i32) {
    %c0_i32 = arith.constant 0 : i32
    %c0_i32_0 = arith.constant 0 : i32
    %c0_i32_1 = arith.constant 0 : i32
    return %c0_i32, %c0_i32_0 : i32, i32
  }
  func.func @transform_6(%arg0: i32) -> (i32, i32) {
    %c0_i32 = arith.constant 0 : i32
    %c0_i32_0 = arith.constant 0 : i32
    %c0_i32_1 = arith.constant 0 : i32
    return %c0_i32, %c0_i32_0 : i32, i32
  }
  func.func @transform_7(%arg0: i32) -> (i32, i32) {
    %c0_i32 = arith.constant 0 : i32
    %c0_i32_0 = arith.constant 0 : i32
    %c0_i32_1 = arith.constant 0 : i32
    return %c0_i32, %c0_i32_0 : i32, i32
  }
  func.func @transform_8(%arg0: i32) -> (i32, i32) {
    %c0_i32 = arith.constant 0 : i32
    %c0_i32_0 = arith.constant 0 : i32
    %c0_i32_1 = arith.constant 0 : i32
    return %c0_i32, %c0_i32_0 : i32, i32
  }
  func.func @transform_9(%arg0: i32) -> i32 {
    %c0_i32 = arith.constant 0 : i32
    %c0_i32_0 = arith.constant 0 : i32
    return %c0_i32 : i32
  }
  func.func @transform_10(%arg0: i32) -> (i32, i32) {
    %c0_i32 = arith.constant 0 : i32
    %c0_i32_0 = arith.constant 0 : i32
    return %arg0, %c0_i32 : i32, i32
  }
}

</mosaic_0001>

<bundles_post_ra>
// kernel: tpu_custom_call.1
= control target key start
LH: loop header
LB: loop body
LE: loop exit
PB: predicated region body
PF: predicated region fallthrough
CT: control target
= control target key end

     0   :  { %16 = vsyncpa [#allocation4], 0  ;;  %s609_s0 = inlined_call_operand.hbm [shape: f32[8,32], index: 0, kind: input, shape index: {}]   ;;  %s610_s1 = inlined_call_operand.hbm [shape: f32[8,32], index: 1, kind: input, shape index: {}]   ;;  %s611_s2 = inlined_call_operand.hbm [shape: f32[8,128], index: 2, kind: input, shape index: {}]   ;;  %s612_s3 = inlined_call_operand.hbm [shape: f32[8,128], index: 3, kind: input, shape index: {}]   ;;  %s613_s4 = inlined_call_operand.hbm [shape: bf16[32,128], index: 4, kind: input, shape index: {}]   ;;  %s614_s5 = inlined_call_operand.vmem [shape: f32[1,128], index: 5, kind: input, shape index: {}]   ;;  %s615_s6 = inlined_call_operand.hbm [shape: bf16[128,128], index: 6, kind: input, shape index: {}]   ;;  %s616_s7 = inlined_call_operand.vmem [shape: f32[1,128], index: 7, kind: input, shape index: {}]   ;;  %s617_s8 = inlined_call_operand.vmem [shape: f32[1,128], index: 8, kind: input, shape index: {}]   ;;  %s618_s9 = inlined_call_operand.<no memory space> [shape: f32[1], index: 9, kind: input, shape index: {}]   ;;  %s619_s10 = inlined_call_operand.vmem [shape: f32[8,1], index: 10, kind: output, shape index: {}]  }
   0x1   :  { %17 = vsyncpa [#allocation6], 0 }
   0x2   :  { %18 = vsyncpa [#allocation9], 0  ;;  %s36_s15 = sshll.u32 %s610_s1, 4  ;;  %s37_s15 = int_to_ptr.hbm [resolvable:$true] %s36_s15 }
   0x3   :  { %19 = vsyncpa [#allocation12], 0  ;;  %s513_s16 = smov [#allocation5]   ;;  %s58_s20 = sshll.u32 %s612_s3, 4  ;;  %s59_s20 = int_to_ptr.hbm [resolvable:$true] %s58_s20 }
   0x4   :  { %s38_s17 = sshll.u32 %s513_s16, 4  ;;  %s514_s21 = smov [#allocation8]   ;;  %s39_s17 = int_to_ptr.vmem [resolvable:$true] %s38_s17 }
   0x5   :  { %41 = dma.hbm_to_vmem [thread:$0]  %s37_s15, 128, %s39_s17, [#allocation6]  }
   0x6   :  { %s60_s22 = sshll.u32 %s514_s21, 4  ;;  %s25_s25 = sshll.u32 %s609_s0, 4  ;;  %s61_s22 = int_to_ptr.vmem [resolvable:$true] %s60_s22  ;;  %s26_s25 = int_to_ptr.hbm [resolvable:$true] %s25_s25 }
   0x7   :  { %63 = dma.hbm_to_vmem [thread:$0]  %s59_s20, 128, %s61_s22, [#allocation9]  }
   0x8   :  { %s47_s27 = sshll.u32 %s611_s2, 4  ;;  %s515_s28 = smov [#allocation3]   ;;  %s48_s27 = int_to_ptr.hbm [resolvable:$true] %s47_s27 }
   0x9   :  { %s27_s29 = sshll.u32 %s515_s28, 4  ;;  %s516_s3 = smov [#allocation7]   ;;  %s28_s29 = int_to_ptr.vmem [resolvable:$true] %s27_s29 }
   0xa   :  { %30 = dma.hbm_to_vmem [thread:$0]  %s26_s25, 128, %s28_s29, [#allocation4]  }
   0xb   :  { %s49_s30 = sshll.u32 %s516_s3, 4  ;;  %s68_s13 = sshll.u32 %s613_s4, 4  ;;  %s50_s30 = int_to_ptr.vmem [resolvable:$true] %s49_s30  ;;  %s69_s13 = int_to_ptr.hbm [resolvable:$true] %s68_s13 }
   0xc   :  { %52 = dma.hbm_to_vmem [thread:$0]  %s48_s27, 128, %s50_s30, [#allocation6]  }
   0xd   :  { %s517_s0 = smov [#allocation10]   ;;  %s83_s2 = sshll.u32 %s615_s6, 4  ;;  %s84_s2 = int_to_ptr.hbm [resolvable:$true] %s83_s2 }
   0xe   :  { %s70_s14 = sshll.u32 %s517_s0, 4  ;;  %s518_s17 = smov 64   ;;  %s71_s14 = int_to_ptr.vmem [resolvable:$true] %s70_s14 }
   0xf   :  { %s519_s18 = smov 4   ;;  %s520_s19 = smov [#allocation11]  }
  0x10   :  { %76 = dma.hbm_to_vmem [thread:$0]  %s69_s13, 256, %s71_s14, [#allocation9], %s518_s17, %s518_s17, %s519_s18  }
  0x11   :  { %s85_s20 = sshll.u32 %s520_s19, 4  ;;  %s86_s20 = int_to_ptr.vmem [resolvable:$true] %s85_s20 }
  0x12   :  { %91 = dma.hbm_to_vmem [thread:$0]  %s84_s2, 1024, %s86_s20, [#allocation12], %s518_s17, %s518_s17, %s519_s18  }
  0x13   :  { %505 = dma.done.wait [#allocation4], 128  }
  0x14   :  { %506 = vsyncadd [#allocation4], 4294967168 }
  0x15   :  { %507 = dma.done.wait [#allocation6], 256  }
  0x16   :  { %508 = vsyncadd [#allocation6], 4294967040 }
  0x17   :  { %509 = dma.done.wait [#allocation9], 384  }
  0x18   :  { %510 = vsyncadd [#allocation9], 4294966912 }
  0x19   :  { %511 = dma.done.wait [#allocation12], 1024  }
  0x1a   :  { %512 = vsyncadd [#allocation12], 4294966272  ;;  %v337_v0 = vld [vmem:[#allocation10 + $0x8] sm:$0xff]  ;;  %v123_v1 = vld [vmem:[#allocation3] sm:$0xff]  ;;  %vm147_vm0 = vcmask 261120   ;;  %v264_v33 = vstv %s618_s9  ;;  %vm285_vm6 = vcmask 7168  }
  0x1b   :  { %v124_v2 = vld [vmem:[#allocation5] sm:$0xff]  ;;  %157 = vmatpush.bf16.msra.mxu0 %v337_v0  ;;  %v336_v4 = vld [vmem:[#allocation10] sm:$0xff]  ;;  %v343_v8 = vld [vmem:[#allocation11 + $0x28] sm:$0xff] }
  0x1c   :  { %v345_v3 = vld [vmem:[#allocation11 + $0x38] sm:$0xff]  ;;  %v125_v5 = vadd.f32 %v124_v2, %v123_v1  ;;  %v344_v6 = vld [vmem:[#allocation11 + $0x30] sm:$0xff]  ;;  %v342_v9 = vld [vmem:[#allocation11 + $0x20] sm:$0xff] }
  0x1d   :  { %238 = vmatpush.bf16.msra.mxu1 %v345_v3  ;;  %v341_v10 = vld [vmem:[#allocation11 + $0x18] sm:$0xff]  ;;  %v340_v11 = vld [vmem:[#allocation11 + $0x10] sm:$0xff]  ;;  %v339_v12 = vld [vmem:[#allocation11 + $0x8] sm:$0xff] }
  0x1e   :  { %v126_v7 = vpack.c.bf16 %v125_v5, %v125_v5  ;;  %v338_v13 = vld [vmem:[#allocation11] sm:$0xff]  ;;  %v354_v14 = vld [vmem:[%s614_s5] ss:$0 sm:$0xff]  ;;  %v254_v27 = vld [vmem:[#allocation8] sm:$0xff] }
  0x1f   :  { %158 = vmatpush.bf16.msra.mxu0 %v336_v4  ;;  %v167_v18 = vld [vmem:[#allocation7] sm:$0xff]  ;;  %v355_v23 = vld [vmem:[%s616_s7] ss:$0 sm:$0xff] }
  0x20   :  { %v356_v28 = vld [vmem:[%s617_s8] ss:$0 sm:$0xff] }
  0x21   :  { %239 = vmatpush.bf16.msra.mxu1 %v344_v6 }
  0x22   :  { %303 = vmatmul.msk.bf16.vlgmr.msra.gmra.mxu0 %vm147_vm0, %v126_v7 }
  0x25   :  { %240 = vmatpush.bf16.msra.mxu1 %v343_v8 }
  0x29   :  { %241 = vmatpush.bf16.msra.mxu1 %v342_v9 }
  0x2d   :  { %242 = vmatpush.bf16.msra.mxu1 %v341_v10 }
  0x31   :  { %243 = vmatpush.bf16.msra.mxu1 %v340_v11 }
  0x35   :  { %244 = vmatpush.bf16.msra.mxu1 %v339_v12 }
  0x39   :  { %245 = vmatpush.bf16.msra.mxu1 %v338_v13 }
  0x9f   :  { %v160_v15 = vpop.f32.mrf.mxu0 }
  0xa0   :  { %v161_v16 = vadd.f32 %v354_v14, %v160_v15 }
  0xa2   :  { %vm164_vm1 = vcmp.gt.f32.partialorder %v161_v16, 0.0  ;;  %v165_v17 = vmul.f32 0.2, %v161_v16 }
  0xa4   :  { %v166_v19 = vsel %vm164_vm1, %v161_v16, %v165_v17 }
  0xa5   :  { %v168_v20 = vmul.f32 %v167_v18, %v166_v19 }
  0xa7   :  { %v162_v21 = vpop.f32.mrf.mxu0  ;;  %v169_v22 = vpack.c.bf16 %v168_v20, %v168_v20 }
  0xa9   :  { %246 = vmatmul.bf16.vlgmr.msra.gmra.mxu1 %v169_v22 }
 0x126   :  { %v247_v24 = vpop.f32.mrf.mxu1 }
 0x127   :  { %v248_v25 = vadd.f32 %v355_v23, %v247_v24 }
 0x129   :  { %vm251_vm2 = vcmp.gt.f32.partialorder %v248_v25, 0.0  ;;  %v252_v26 = vmul.f32 0.2, %v248_v25 }
 0x12b   :  { %v253_v29 = vsel %vm251_vm2, %v248_v25, %v252_v26 }
 0x12c   :  { %v255_v30 = vmul.f32 %v254_v27, %v253_v29 }
 0x12e   :  { %v249_v31 = vpop.f32.mrf.mxu1  ;;  %v260_v32 = vmul.f32 %v356_v28, %v255_v30 }
 0x130   :  { %261 = vadd.xlane.f32.xlu0 %v260_v32 }
 0x1a3   :  { %v262_v34 = vpop.xlane.xlu0 %261 }
 0x1a4   :  { %v265_v35 = vadd.f32 %v264_v33, %v262_v34 }
 0x1a6   :  { %v266_v36 = vsub.f32 0.0, %v265_v35 }
 0x1a8   :  { %v267_v37 = vmul.f32 1.442695, %v266_v36 }
 0x1aa   :  { %357 = vpow2.f32 %v267_v37 }
 0x1b0   :  { %v358_v38 = vpop.eup %357 }
 0x1b1   :  { %v269_v39 = vadd.f32 1.0, %v358_v38 }
 0x1b3   :  { %359 = vrcp.f32 %v269_v39  ;;  %v281_v43 = vand.u32 2147483648, %v269_v39  ;;  %v279_v45 = vand.u32 2147483647, %v269_v39  ;;  %vm275_vm4 = vweird.f32 %v269_v39 }
 0x1b5   :  { %v282_v47 = vor.u32 1.1754944e-38, %v281_v43  ;;  %vm280_vm7 = vcmp.eq.f32.partialorder %v279_v45, 8.507059e+37 }
 0x1b9   :  { %v360_v40 = vpop.eup %359 }
 0x1ba   :  { %v271_v41 = vmul.f32 %v360_v40, %v269_v39  ;;  %vm276_vm3 = vweird.f32 %v360_v40 }
 0x1bb   :  { %vm277_vm5 = vmor %vm275_vm4, %vm276_vm3 }
 0x1bc   :  { %v272_v42 = vsub.f32 1.0, %v271_v41 }
 0x1be   :  { %v273_v44 = vmul.f32 %v360_v40, %v272_v42 }
 0x1c0   :  { %v274_v46 = vadd.f32 %v360_v40, %v273_v44 }
 0x1c2   :  { %v278_v48 = vsel %vm277_vm5, %v360_v40, %v274_v46 }
 0x1c3   :  { %v283_v49 = vsel %vm280_vm7, %v282_v47, %v278_v48 }
 0x1c4   :  { %286 = vst.msk [vmem:[%s619_s10] sm:$0xff] %vm285_vm6, %v283_v49 }
 0x1c5   :  { %291 = vsyncpa [#allocation4], 1 }
 0x1c6   :  { %292 = vsyncpa [#allocation6], 1 }
 0x1c7   :  { %293 = vsyncpa [#allocation9], 1 }
 0x1c8   :  { %294 = vsyncpa [#allocation12], 1 }

</bundles_post_ra>
